<compile_context>
chip_gen: v6e
topology: v6e:2x2x1
jax: 0.10.0
libtpu: 0.0.40
codegen_flags: <defaults>
</compile_context>

<pallas_src>
import functools

import jax
import jax.numpy as jnp
from jax.experimental import pallas as pl
from jax.experimental.pallas import tpu as pltpu

_LANES = 512  # lane-dense slab width (multiple of 128)


def _silu_kernel(beta_ref, x_ref, o_ref):
    """SiLU with beta: x * sigmoid(beta * x), computed in f32 (EUP-friendly)."""
    x = x_ref[...].astype(jnp.float32)
    beta = beta_ref[0]
    o_ref[...] = (x * jax.nn.sigmoid(beta * x)).astype(o_ref.dtype)


def _relu_kernel(x_ref, o_ref):
    """ReLU: clamp(min=0)."""
    x = x_ref[...]
    o_ref[...] = jnp.maximum(x, jnp.zeros((), x.dtype))


@functools.lru_cache(maxsize=1)
def _block_config():
    """Per-generation (max_block_rows, vmem_limit_bytes)."""
    try:
        kind = jax.devices()[0].device_kind.lower()
    except Exception:  # pragma: no cover - defensive fallback
        kind = ""
    if "v7" in kind:
        # 8 MiB blocks; in+out double-buffered = 32 MiB -> raise scoped limit
        # (v7x physical VMEM per TC is 64 MiB, default scoped limit 32 MiB).
        return 4096, 40 << 20
    if "v6" in kind:
        # 4 MiB blocks; 16 MiB double-buffered fits v6e's 32 MiB default.
        return 2048, None
    # v5e and older/unknown: 2 MiB blocks fit the 16 MiB default scoped VMEM.
    return 1024, None


@functools.partial(
    jax.jit, static_argnames=("use_relu", "max_block_rows", "vmem_limit_bytes")
)
def _forward_impl(x, beta, *, use_relu, max_block_rows, vmem_limit_bytes):
    orig_shape = x.shape
    orig_dtype = x.dtype
    n = x.size

    def _tail_fn(t):
        # Tiny (<512 element) remainder: plain jnp, negligible work.
        if use_relu:
            return jnp.maximum(t, jnp.zeros((), t.dtype))
        tf = t.astype(jnp.float32)
        return (tf * jax.nn.sigmoid(beta[0] * tf)).astype(t.dtype)

    flat = x.reshape(-1)
    rows = n // _LANES
    rem = n - rows * _LANES

    if rows == 0:
        # Smaller than one lane row: no kernel launch needed.
        return _tail_fn(flat).reshape(orig_shape)

    head = flat[: rows * _LANES].reshape(rows, _LANES)

    # Block sizing: biggest block that fits the per-gen budget, but guarantee
    # >=2 grid steps for non-trivial slabs so dual-TensorCore chips (v7x)
    # shard the "parallel" axis across both cores.
    if rows <= 8:
        block_rows = rows  # full-array block (equals full dim -> always legal)
    else:
        half = -(-rows // 2)          # cdiv(rows, 2)
        half = -(-half // 8) * 8      # round up to a sublane multiple
        block_rows = min(max_block_rows, half)
    grid = (pl.cdiv(rows, block_rows),)

    block_spec = pl.BlockSpec((block_rows, _LANES), lambda i: (i, 0))
    out_shape = jax.ShapeDtypeStruct((rows, _LANES), orig_dtype)
    compiler_params = pltpu.CompilerParams(
        dimension_semantics=("parallel",),
        vmem_limit_bytes=vmem_limit_bytes,
    )

    if use_relu:
        out2d = pl.pallas_call(
            _relu_kernel,
            out_shape=out_shape,
            grid_spec=pltpu.PrefetchScalarGridSpec(
                num_scalar_prefetch=0,
                grid=grid,
                in_specs=[block_spec],
                out_specs=block_spec,
            ),
            compiler_params=compiler_params,
        )(head)
    else:
        out2d = pl.pallas_call(
            _silu_kernel,
            out_shape=out_shape,
            grid_spec=pltpu.PrefetchScalarGridSpec(
                num_scalar_prefetch=0,
                grid=grid,
                in_specs=[
                    pl.BlockSpec(memory_space=pltpu.MemorySpace.SMEM),  # beta
                    block_spec,
                ],
                out_specs=block_spec,
            ),
            compiler_params=compiler_params,
        )(beta, head)

    if rem:
        out_flat = jnp.concatenate(
            [out2d.reshape(-1), _tail_fn(flat[rows * _LANES :])]
        )
        return out_flat.reshape(orig_shape)
    return out2d.reshape(orig_shape)


def forward_silu_backward_relu(x, beta=1.0):
    """Forward pass of ForwardSiLUBackwardReLU.

    The beta<10 vs ReLU branch is decided on the host (static per compile);
    beta itself is passed as a runtime SMEM scalar so drifting beta values do
    not trigger recompilation (unless the drift crosses the 10.0 threshold,
    which flips the branch and recompiles exactly once).
    """
    beta_f = float(beta)
    use_relu = beta_f >= 10.0
    max_block_rows, vmem_limit = _block_config()
    beta_arr = jnp.asarray([beta_f], dtype=jnp.float32)
    return _forward_impl(
        x,
        beta_arr,
        use_relu=use_relu,
        max_block_rows=max_block_rows,
        vmem_limit_bytes=vmem_limit,
    )


class ForwardSiLUBackwardReLU:
    """JAX mirror of the PyTorch module (forward semantics only)."""
    # TODO(synk): the ReLU-masked custom backward (grad zeroed where x < 0)
    # would need jax.custom_vjp; only the forward kernel is implemented here.

    def __init__(self, beta=1.0, delta_beta=0.0):
        self.beta = float(beta)
        self.delta_beta = float(delta_beta)

    def __call__(self, x):
        result = forward_silu_backward_relu(x, self.beta)
        self.beta += self.delta_beta
        return result


def _reference(x, beta):
    xf = x.astype(jnp.float32)
    if beta < 10:
        y = xf / (1.0 + jnp.exp(-beta * xf))
    else:
        y = jnp.maximum(xf, 0.0)
    return y.astype(x.dtype)


if __name__ == "__main__":
    key = jax.random.PRNGKey(0)
    # NCHW-style input, consistent with typical conv activation usage
    x = jax.random.normal(key, (2, 4, 16, 16), dtype=jnp.float32)

    mod = ForwardSiLUBackwardReLU(beta=1.0, delta_beta=0.0)
    out = jax.block_until_ready(mod(x))

    ref = _reference(x, 1.0)
    assert out.shape == x.shape and out.dtype == x.dtype
    assert jnp.allclose(out, ref, atol=1e-5, rtol=1e-5)

    # exercise the beta >= 10 (ReLU) branch
    out_relu = jax.block_until_ready(forward_silu_backward_relu(x, beta=12.0))
    assert jnp.allclose(out_relu, jnp.maximum(x, 0.0), atol=1e-6)

    # non-lane-aligned size, big enough to hit the kernel-prefix + jnp-tail path
    x_odd = jax.random.normal(jax.random.PRNGKey(1), (3, 5, 70), dtype=jnp.float32)
    out_odd = jax.block_until_ready(forward_silu_backward_relu(x_odd, beta=1.0))
    assert jnp.allclose(out_odd, _reference(x_odd, 1.0), atol=1e-5, rtol=1e-5)

    # tiny (<512 elements) unaligned size: pure-jnp fallback path
    x_tiny = jax.random.normal(jax.random.PRNGKey(2), (3, 5, 7), dtype=jnp.float32)
    out_tiny = jax.block_until_ready(forward_silu_backward_relu(x_tiny, beta=1.0))
    assert jnp.allclose(out_tiny, _reference(x_tiny, 1.0), atol=1e-5, rtol=1e-5)

    print("KERNEL_OK")
</pallas_src>

<mosaic_0001>
module attributes {stable_mosaic.version = 11 : i64} {
  func.func @_silu_kernel(%arg0: i32, %arg1: memref<1xf32, #tpu.memory_space<smem>>, %arg2: memref<4x512xf32, #tpu.memory_space<vmem>>, %arg3: memref<4x512xf32, #tpu.memory_space<vmem>>) attributes {dimension_semantics = [#tpu.dimension_semantics<parallel>], iteration_bounds = array<i64: 1>, scalar_prefetch = 0 : i64, scratch_operands = 0 : i64, tpu.core_type = #tpu.core_type<tc>, window_params = [{transform_indices = @transform_0, window_bounds = array<i64: 1>}, {transform_indices = @transform_1, window_bounds = array<i64: 4, 512>}, {transform_indices = @transform_2, window_bounds = array<i64: 4, 512>}]} {
    %c0 = arith.constant 0 : index
    %c0_0 = arith.constant 0 : index
    %0 = vector.load %arg2[%c0, %c0_0] : memref<4x512xf32, #tpu.memory_space<vmem>>, vector<4x512xf32>
    %c0_1 = arith.constant 0 : index
    %1 = memref.load %arg1[%c0_1] : memref<1xf32, #tpu.memory_space<smem>>
    %2 = vector.broadcast %1 : f32 to vector<4x512xf32>
    %3 = arith.mulf %2, %0 : vector<4x512xf32>
    %4 = arith.negf %3 : vector<4x512xf32>
    %5 = math.exp %4 : vector<4x512xf32>
    %cst = arith.constant 1.000000e+00 : f32
    %6 = vector.broadcast %cst : f32 to vector<4x512xf32>
    %7 = arith.addf %6, %5 : vector<4x512xf32>
    %8 = arith.divf %6, %7 : vector<4x512xf32>
    %9 = arith.mulf %0, %8 : vector<4x512xf32>
    %c0_2 = arith.constant 0 : index
    %c0_3 = arith.constant 0 : index
    %10 = vector.load %arg3[%c0_2, %c0_3] : memref<4x512xf32, #tpu.memory_space<vmem>>, vector<4x512xf32>
    tpu.vector_store %arg3[%c0_2, %c0_3], %9 {strides = array<i32>} : memref<4x512xf32, #tpu.memory_space<vmem>>, vector<4x512xf32>,
    return
  }
  func.func @transform_0(%arg0: i32) -> i32 {
    %c0_i32 = arith.constant 0 : i32
    %c0_i32_0 = arith.constant 0 : i32
    return %c0_i32 : i32
  }
  func.func @transform_1(%arg0: i32) -> (i32, i32) {
    %c0_i32 = arith.constant 0 : i32
    %c0_i32_0 = arith.constant 0 : i32
    return %arg0, %c0_i32 : i32, i32
  }
  func.func @transform_2(%arg0: i32) -> (i32, i32) {
    %c0_i32 = arith.constant 0 : i32
    %c0_i32_0 = arith.constant 0 : i32
    return %arg0, %c0_i32 : i32, i32
  }
}

</mosaic_0001>

<bundles_post_ra>
// kernel: _forward_impl.1
= control target key start
LH: loop header
LB: loop body
LE: loop exit
PB: predicated region body
PF: predicated region fallthrough
CT: control target
= control target key end

     0   :  { %s78_s0 = inlined_call_operand.<no memory space> [shape: f32[1], index: 0, kind: input, shape index: {}]   ;;  %s79_s1 = inlined_call_operand.vmem [shape: f32[4,512], index: 1, kind: input, shape index: {}]   ;;  %s80_s2 = inlined_call_operand.vmem [shape: f32[4,512], index: 2, kind: output, shape index: {}]  }
   0x1   :  { %v12_v0 = vld [vmem:[%s79_s1] sm:$0xff]  ;;  %v15_v1 = vstv %s78_s0  ;;  %v13_v2 = vld [vmem:[%s79_s1 + $0x8] sm:$0xff] }
   0x2   :  { %v16_v3 = vmul.f32 %v15_v1, %v12_v0  ;;  %v17_v4 = vmul.f32 %v15_v1, %v13_v2 }
   0x4   :  { %v38_v5 = vmul.f32 -1.442695, %v16_v3  ;;  %v39_v6 = vmul.f32 -1.442695, %v17_v4 }
   0x6   :  { %40 = vpow2.f32 %v38_v5 }
   0x7   :  { %42 = vpow2.f32 %v39_v6 }
  0x13   :  { %v41_v7 = vpop.eup %40 }
  0x14   :  { %v43_v8 = vpop.eup %42  ;;  %v24_v9 = vadd.f32 1.0, %v41_v7 }
  0x15   :  { %v25_v10 = vadd.f32 1.0, %v43_v8 }
  0x16   :  { %44 = vrcp.f32 %v24_v9 }
  0x17   :  { %46 = vrcp.f32 %v25_v10 }
  0x23   :  { %v45_v11 = vpop.eup %44 }
  0x24   :  { %v47_v12 = vpop.eup %46  ;;  %v30_v13 = vmul.f32 %v45_v11, %v12_v0 }
  0x25   :  { %v31_v14 = vmul.f32 %v47_v12, %v13_v2 }
  0x26   :  { %32 = vst [vmem:[%s80_s2] sm:$0xff] %v30_v13 }
  0x27   :  { %33 = vst [vmem:[%s80_s2 + $0x8] sm:$0xff] %v31_v14 }

</bundles_post_ra>
